<compile_context>
chip_gen: v6e
topology: v6e:2x2x1
jax: 0.10.0
libtpu: 0.0.40
codegen_flags: <defaults>
</compile_context>

<pallas_src>
import jax
import jax.numpy as jnp
from jax import lax
from jax.experimental import pallas as pl
from jax.experimental.pallas import tpu as pltpu

HIDDEN = 32    # hidden_size
VOCAB = 64     # output_size
VPAD = 128     # logits padded to a full lane width


def decoder_rnn_kernel(tok_ref,      # SMEM (T,) int32 token ids
                       gi_ref,       # VMEM (V, 3H)   precomputed relu(emb) @ w_ih.T + b_ih
                       whh_ref,      # VMEM (H, 3H)   w_hh.T
                       bhh_ref,      # VMEM (1, 3H)   b_hh
                       h0_ref,       # VMEM (1, H)    initial hidden
                       wout_ref,     # VMEM (H, VPAD) w_out.T, lane-padded with zeros
                       bout_ref,     # VMEM (1, VPAD) b_out, lane-padded with zeros
                       logits_ref,   # out  (T_pad, VPAD)
                       hout_ref,     # out  (1, H)    final hidden
                       h_hist):      # VMEM scratch (T_pad, H) hidden-state history
    H = h0_ref.shape[-1]
    T = tok_ref.shape[0]

    # Zero the history so padding rows (T..T_pad-1) are well defined.
    h_hist[...] = jnp.zeros_like(h_hist)

    def step(t, h):
        tok = tok_ref[t]
        # Precomputed input gates: one dynamic-row gather, no matmul, no relu.
        gi = gi_ref[pl.ds(tok, 1), :]                                    # (1, 3H)
        # Recurrent projection: h stays in vregs (loop carry), bias added on VPU.
        gh = jnp.dot(h, whh_ref[...],
                     preferred_element_type=jnp.float32) + bhh_ref[...]  # (1, 3H)
        # GRU gates, PyTorch order [r, z, n].
        r = jax.nn.sigmoid(gi[:, 0:H] + gh[:, 0:H])
        z = jax.nn.sigmoid(gi[:, H:2 * H] + gh[:, H:2 * H])
        n = jnp.tanh(gi[:, 2 * H:3 * H] + r * gh[:, 2 * H:3 * H])
        h_new = (1.0 - z) * n + z * h                                    # (1, H)
        # Single per-step store: stash the hidden row for the batched projection.
        h_hist[pl.ds(t, 1), :] = h_new
        return h_new

    h_final = lax.fori_loop(0, T, step, h0_ref[...], unroll=True)

    hout_ref[...] = h_final

    # One lane-dense output projection for all steps (full (8,128) tiles).
    logits_ref[...] = jnp.dot(h_hist[...], wout_ref[...],
                              preferred_element_type=jnp.float32) + bout_ref[...]


def pack_params(params):
    """Precompute the input-gate table and lay out the recurrent / output weights."""
    H, V = HIDDEN, VOCAB
    emb_relu = jnp.maximum(params["embedding"].astype(jnp.float32), 0.0)          # (V, H)
    gi_table = (emb_relu @ params["w_ih"].T.astype(jnp.float32)
                + params["b_ih"].astype(jnp.float32)).astype(jnp.float32)         # (V, 3H)
    whh_t = params["w_hh"].T.astype(jnp.float32)                                  # (H, 3H)
    bhh = params["b_hh"].reshape(1, 3 * H).astype(jnp.float32)                    # (1, 3H)
    wout_t = jnp.pad(params["w_out"].T, ((0, 0), (0, VPAD - V))).astype(jnp.float32)   # (H, VPAD)
    bout = jnp.pad(params["b_out"].reshape(1, V),
                   ((0, 0), (0, VPAD - V))).astype(jnp.float32)                   # (1, VPAD)
    return gi_table, whh_t, bhh, wout_t, bout


def decoder_rnn_forward(tokens, hidden, params):
    """Fused T-step decode.

    tokens: int32 (T,)  -- token id per step (T=1 reproduces the module's forward exactly)
    hidden: float32 (1, 1, H)
    Returns (logits (T, V), hidden (1, 1, H)).
    """
    H, V = HIDDEN, VOCAB
    T = int(tokens.shape[0])
    T_pad = ((T + 7) // 8) * 8                     # sublane-dense output tiles

    gi_table, whh_t, bhh, wout_t, bout = pack_params(params)
    h2d = hidden.reshape(1, H).astype(jnp.float32)
    tokens = tokens.astype(jnp.int32)

    vmem = pl.BlockSpec(memory_space=pltpu.MemorySpace.VMEM)
    smem = pl.BlockSpec(memory_space=pltpu.MemorySpace.SMEM)

    logits_pad, h_final = pl.pallas_call(
        decoder_rnn_kernel,
        out_shape=(
            jax.ShapeDtypeStruct((T_pad, VPAD), jnp.float32),
            jax.ShapeDtypeStruct((1, H), jnp.float32),
        ),
        in_specs=[smem, vmem, vmem, vmem, vmem, vmem, vmem],
        out_specs=(vmem, vmem),
        scratch_shapes=[pltpu.VMEM((T_pad, H), jnp.float32)],
    )(tokens, gi_table, whh_t, bhh, h2d, wout_t, bout)

    return logits_pad[:T, :V], h_final.reshape(1, 1, H)


def init_params(key):
    ks = jax.random.split(key, 7)
    s = 0.1
    return {
        "embedding": s * jax.random.normal(ks[0], (VOCAB, HIDDEN), jnp.float32),
        "w_ih": s * jax.random.normal(ks[1], (3 * HIDDEN, HIDDEN), jnp.float32),
        "w_hh": s * jax.random.normal(ks[2], (3 * HIDDEN, HIDDEN), jnp.float32),
        "b_ih": s * jax.random.normal(ks[3], (3 * HIDDEN,), jnp.float32),
        "b_hh": s * jax.random.normal(ks[4], (3 * HIDDEN,), jnp.float32),
        "w_out": s * jax.random.normal(ks[5], (VOCAB, HIDDEN), jnp.float32),
        "b_out": s * jax.random.normal(ks[6], (VOCAB,), jnp.float32),
    }


def ref_forward_seq(tokens, hidden, p):
    """Pure-JAX reference: apply the PyTorch module step-by-step."""
    H = HIDDEN
    h = hidden.reshape(1, H)
    outs = []
    for t in range(tokens.shape[0]):
        x = jnp.maximum(p["embedding"][tokens[t]], 0.0)[None, :]
        gi = x @ p["w_ih"].T + p["b_ih"]
        gh = h @ p["w_hh"].T + p["b_hh"]
        r = jax.nn.sigmoid(gi[:, :H] + gh[:, :H])
        z = jax.nn.sigmoid(gi[:, H:2 * H] + gh[:, H:2 * H])
        n = jnp.tanh(gi[:, 2 * H:] + r * gh[:, 2 * H:])
        h = (1.0 - z) * n + z * h
        outs.append(h @ p["w_out"].T + p["b_out"])
    return jnp.concatenate(outs, axis=0), h.reshape(1, 1, H)


if __name__ == "__main__":
    key = jax.random.PRNGKey(0)
    params = init_params(key)

    # Fused multi-step decode (teacher-forced token sequence).
    T = 8
    tokens = jax.random.randint(jax.random.PRNGKey(1), (T,), 0, VOCAB, dtype=jnp.int32)
    hidden0 = jnp.zeros((1, 1, HIDDEN), dtype=jnp.float32)   # initHidden()

    logits, h_final = decoder_rnn_forward(tokens, hidden0, params)
    jax.block_until_ready((logits, h_final))

    ref_logits, ref_h = ref_forward_seq(tokens, hidden0, params)
    assert logits.shape == (T, VOCAB) and h_final.shape == (1, 1, HIDDEN)
    assert jnp.allclose(logits, ref_logits, atol=1e-4, rtol=1e-4)
    assert jnp.allclose(h_final, ref_h, atol=1e-4, rtol=1e-4)

    # Single-step call == the original module's forward(input, hidden).
    logits1, h1 = decoder_rnn_forward(tokens[:1], hidden0, params)
    jax.block_until_ready((logits1, h1))
    ref_l1, ref_h1 = ref_forward_seq(tokens[:1], hidden0, params)
    assert logits1.shape == (1, VOCAB) and h1.shape == (1, 1, HIDDEN)
    assert jnp.allclose(logits1, ref_l1, atol=1e-4, rtol=1e-4)
    assert jnp.allclose(h1, ref_h1, atol=1e-4, rtol=1e-4)

    print("KERNEL_OK")
</pallas_src>

<mosaic_0001>
module attributes {stable_mosaic.version = 11 : i64} {
  func.func @decoder_rnn_kernel(%arg0: memref<8xi32, #tpu.memory_space<smem>>, %arg1: memref<64x96xf32, #tpu.memory_space<vmem>>, %arg2: memref<32x96xf32, #tpu.memory_space<vmem>>, %arg3: memref<1x96xf32, #tpu.memory_space<vmem>>, %arg4: memref<1x32xf32, #tpu.memory_space<vmem>>, %arg5: memref<32x128xf32, #tpu.memory_space<vmem>>, %arg6: memref<1x128xf32, #tpu.memory_space<vmem>>, %arg7: memref<8x128xf32, #tpu.memory_space<vmem>>, %arg8: memref<1x32xf32, #tpu.memory_space<vmem>>, %arg9: memref<8x32xf32, #tpu.memory_space<vmem>>) attributes {dimension_semantics = [], scalar_prefetch = 0 : i64, scratch_operands = 1 : i64, tpu.core_type = #tpu.core_type<tc>} {
    %cst = arith.constant 0.000000e+00 : f32
    %0 = vector.broadcast %cst : f32 to vector<8x32xf32>
    %c0 = arith.constant 0 : index
    %c0_0 = arith.constant 0 : index
    %1 = vector.load %arg9[%c0, %c0_0] : memref<8x32xf32, #tpu.memory_space<vmem>>, vector<8x32xf32>
    tpu.vector_store %arg9[%c0, %c0_0], %0 {strides = array<i32>} : memref<8x32xf32, #tpu.memory_space<vmem>>, vector<8x32xf32>,
    %c0_1 = arith.constant 0 : index
    %c0_2 = arith.constant 0 : index
    %2 = vector.load %arg4[%c0_1, %c0_2] : memref<1x32xf32, #tpu.memory_space<vmem>>, vector<1x32xf32>
    %c0_i32 = arith.constant 0 : i32
    %3 = arith.index_cast %c0_i32 : i32 to index
    %4 = memref.load %arg0[%3] : memref<8xi32, #tpu.memory_space<smem>>
    %5 = arith.index_cast %4 : i32 to index
    %c0_3 = arith.constant 0 : index
    %6 = vector.load %arg1[%5, %c0_3] : memref<64x96xf32, #tpu.memory_space<vmem>>, vector<1x96xf32>
    %c0_4 = arith.constant 0 : index
    %c0_5 = arith.constant 0 : index
    %7 = vector.load %arg2[%c0_4, %c0_5] : memref<32x96xf32, #tpu.memory_space<vmem>>, vector<32x96xf32>
    %cst_6 = arith.constant dense<0.000000e+00> : vector<1x96xf32>
    %8 = tpu.matmul %2, %7, %cst_6 {dimension_numbers = #tpu.dot_dimension_numbers<[1], [0], [0], [1], [0, 0, 1, 1], [], []>} : vector<1x32xf32>, vector<32x96xf32>, vector<1x96xf32> -> vector<1x96xf32>
    %c0_7 = arith.constant 0 : index
    %c0_8 = arith.constant 0 : index
    %9 = vector.load %arg3[%c0_7, %c0_8] : memref<1x96xf32, #tpu.memory_space<vmem>>, vector<1x96xf32>
    %10 = arith.addf %8, %9 : vector<1x96xf32>
    %11 = vector.extract_strided_slice %6 {offsets = [0, 0], sizes = [1, 32], strides = [1, 1]} : vector<1x96xf32> to vector<1x32xf32>
    %12 = vector.extract_strided_slice %10 {offsets = [0, 0], sizes = [1, 32], strides = [1, 1]} : vector<1x96xf32> to vector<1x32xf32>
    %13 = arith.addf %11, %12 : vector<1x32xf32>
    %14 = arith.negf %13 : vector<1x32xf32>
    %15 = math.exp %14 : vector<1x32xf32>
    %cst_9 = arith.constant 1.000000e+00 : f32
    %16 = vector.broadcast %cst_9 : f32 to vector<1x32xf32>
    %17 = arith.addf %16, %15 : vector<1x32xf32>
    %18 = arith.divf %16, %17 : vector<1x32xf32>
    %19 = vector.extract_strided_slice %6 {offsets = [0, 32], sizes = [1, 32], strides = [1, 1]} : vector<1x96xf32> to vector<1x32xf32>
    %20 = vector.extract_strided_slice %10 {offsets = [0, 32], sizes = [1, 32], strides = [1, 1]} : vector<1x96xf32> to vector<1x32xf32>
    %21 = arith.addf %19, %20 : vector<1x32xf32>
    %22 = arith.negf %21 : vector<1x32xf32>
    %23 = math.exp %22 : vector<1x32xf32>
    %cst_10 = arith.constant 1.000000e+00 : f32
    %24 = vector.broadcast %cst_10 : f32 to vector<1x32xf32>
    %25 = arith.addf %24, %23 : vector<1x32xf32>
    %26 = arith.divf %24, %25 : vector<1x32xf32>
    %27 = vector.extract_strided_slice %6 {offsets = [0, 64], sizes = [1, 32], strides = [1, 1]} : vector<1x96xf32> to vector<1x32xf32>
    %28 = vector.extract_strided_slice %10 {offsets = [0, 64], sizes = [1, 32], strides = [1, 1]} : vector<1x96xf32> to vector<1x32xf32>
    %29 = arith.mulf %18, %28 : vector<1x32xf32>
    %30 = arith.addf %27, %29 : vector<1x32xf32>
    %31 = math.tanh %30 : vector<1x32xf32>
    %cst_11 = arith.constant 1.000000e+00 : f32
    %32 = vector.broadcast %cst_11 : f32 to vector<1x32xf32>
    %33 = arith.subf %32, %26 : vector<1x32xf32>
    %34 = arith.mulf %33, %31 : vector<1x32xf32>
    %35 = arith.mulf %26, %2 : vector<1x32xf32>
    %36 = arith.addf %34, %35 : vector<1x32xf32>
    %37 = arith.index_cast %c0_i32 : i32 to index
    %c0_12 = arith.constant 0 : index
    %38 = vector.load %arg9[%37, %c0_12] : memref<8x32xf32, #tpu.memory_space<vmem>>, vector<1x32xf32>
    tpu.vector_store %arg9[%37, %c0_12], %36 {strides = array<i32>} : memref<8x32xf32, #tpu.memory_space<vmem>>, vector<1x32xf32>,
    %c1_i32 = arith.constant 1 : i32
    %39 = arith.index_cast %c1_i32 : i32 to index
    %40 = memref.load %arg0[%39] : memref<8xi32, #tpu.memory_space<smem>>
    %41 = arith.index_cast %40 : i32 to index
    %c0_13 = arith.constant 0 : index
    %42 = vector.load %arg1[%41, %c0_13] : memref<64x96xf32, #tpu.memory_space<vmem>>, vector<1x96xf32>
    %c0_14 = arith.constant 0 : index
    %c0_15 = arith.constant 0 : index
    %43 = vector.load %arg2[%c0_14, %c0_15] : memref<32x96xf32, #tpu.memory_space<vmem>>, vector<32x96xf32>
    %cst_16 = arith.constant dense<0.000000e+00> : vector<1x96xf32>
    %44 = tpu.matmul %36, %43, %cst_16 {dimension_numbers = #tpu.dot_dimension_numbers<[1], [0], [0], [1], [0, 0, 1, 1], [], []>} : vector<1x32xf32>, vector<32x96xf32>, vector<1x96xf32> -> vector<1x96xf32>
    %c0_17 = arith.constant 0 : index
    %c0_18 = arith.constant 0 : index
    %45 = vector.load %arg3[%c0_17, %c0_18] : memref<1x96xf32, #tpu.memory_space<vmem>>, vector<1x96xf32>
    %46 = arith.addf %44, %45 : vector<1x96xf32>
    %47 = vector.extract_strided_slice %42 {offsets = [0, 0], sizes = [1, 32], strides = [1, 1]} : vector<1x96xf32> to vector<1x32xf32>
    %48 = vector.extract_strided_slice %46 {offsets = [0, 0], sizes = [1, 32], strides = [1, 1]} : vector<1x96xf32> to vector<1x32xf32>
    %49 = arith.addf %47, %48 : vector<1x32xf32>
    %50 = arith.negf %49 : vector<1x32xf32>
    %51 = math.exp %50 : vector<1x32xf32>
    %cst_19 = arith.constant 1.000000e+00 : f32
    %52 = vector.broadcast %cst_19 : f32 to vector<1x32xf32>
    %53 = arith.addf %52, %51 : vector<1x32xf32>
    %54 = arith.divf %52, %53 : vector<1x32xf32>
    %55 = vector.extract_strided_slice %42 {offsets = [0, 32], sizes = [1, 32], strides = [1, 1]} : vector<1x96xf32> to vector<1x32xf32>
    %56 = vector.extract_strided_slice %46 {offsets = [0, 32], sizes = [1, 32], strides = [1, 1]} : vector<1x96xf32> to vector<1x32xf32>
    %57 = arith.addf %55, %56 : vector<1x32xf32>
    %58 = arith.negf %57 : vector<1x32xf32>
    %59 = math.exp %58 : vector<1x32xf32>
    %cst_20 = arith.constant 1.000000e+00 : f32
    %60 = vector.broadcast %cst_20 : f32 to vector<1x32xf32>
    %61 = arith.addf %60, %59 : vector<1x32xf32>
    %62 = arith.divf %60, %61 : vector<1x32xf32>
    %63 = vector.extract_strided_slice %42 {offsets = [0, 64], sizes = [1, 32], strides = [1, 1]} : vector<1x96xf32> to vector<1x32xf32>
    %64 = vector.extract_strided_slice %46 {offsets = [0, 64], sizes = [1, 32], strides = [1, 1]} : vector<1x96xf32> to vector<1x32xf32>
    %65 = arith.mulf %54, %64 : vector<1x32xf32>
    %66 = arith.addf %63, %65 : vector<1x32xf32>
    %67 = math.tanh %66 : vector<1x32xf32>
    %cst_21 = arith.constant 1.000000e+00 : f32
    %68 = vector.broadcast %cst_21 : f32 to vector<1x32xf32>
    %69 = arith.subf %68, %62 : vector<1x32xf32>
    %70 = arith.mulf %69, %67 : vector<1x32xf32>
    %71 = arith.mulf %62, %36 : vector<1x32xf32>
    %72 = arith.addf %70, %71 : vector<1x32xf32>
    %73 = arith.index_cast %c1_i32 : i32 to index
    %c0_22 = arith.constant 0 : index
    %74 = vector.load %arg9[%73, %c0_22] : memref<8x32xf32, #tpu.memory_space<vmem>>, vector<1x32xf32>
    tpu.vector_store %arg9[%73, %c0_22], %72 {strides = array<i32>} : memref<8x32xf32, #tpu.memory_space<vmem>>, vector<1x32xf32>,
    %c2_i32 = arith.constant 2 : i32
    %75 = arith.index_cast %c2_i32 : i32 to index
    %76 = memref.load %arg0[%75] : memref<8xi32, #tpu.memory_space<smem>>
    %77 = arith.index_cast %76 : i32 to index
    %c0_23 = arith.constant 0 : index
    %78 = vector.load %arg1[%77, %c0_23] : memref<64x96xf32, #tpu.memory_space<vmem>>, vector<1x96xf32>
    %c0_24 = arith.constant 0 : index
    %c0_25 = arith.constant 0 : index
    %79 = vector.load %arg2[%c0_24, %c0_25] : memref<32x96xf32, #tpu.memory_space<vmem>>, vector<32x96xf32>
    %cst_26 = arith.constant dense<0.000000e+00> : vector<1x96xf32>
    %80 = tpu.matmul %72, %79, %cst_26 {dimension_numbers = #tpu.dot_dimension_numbers<[1], [0], [0], [1], [0, 0, 1, 1], [], []>} : vector<1x32xf32>, vector<32x96xf32>, vector<1x96xf32> -> vector<1x96xf32>
    %c0_27 = arith.constant 0 : index
    %c0_28 = arith.constant 0 : index
    %81 = vector.load %arg3[%c0_27, %c0_28] : memref<1x96xf32, #tpu.memory_space<vmem>>, vector<1x96xf32>
    %82 = arith.addf %80, %81 : vector<1x96xf32>
    %83 = vector.extract_strided_slice %78 {offsets = [0, 0], sizes = [1, 32], strides = [1, 1]} : vector<1x96xf32> to vector<1x32xf32>
    %84 = vector.extract_strided_slice %82 {offsets = [0, 0], sizes = [1, 32], strides = [1, 1]} : vector<1x96xf32> to vector<1x32xf32>
    %85 = arith.addf %83, %84 : vector<1x32xf32>
    %86 = arith.negf %85 : vector<1x32xf32>
    %87 = math.exp %86 : vector<1x32xf32>
    %cst_29 = arith.constant 1.000000e+00 : f32
    %88 = vector.broadcast %cst_29 : f32 to vector<1x32xf32>
    %89 = arith.addf %88, %87 : vector<1x32xf32>
    %90 = arith.divf %88, %89 : vector<1x32xf32>
    %91 = vector.extract_strided_slice %78 {offsets = [0, 32], sizes = [1, 32], strides = [1, 1]} : vector<1x96xf32> to vector<1x32xf32>
    %92 = vector.extract_strided_slice %82 {offsets = [0, 32], sizes = [1, 32], strides = [1, 1]} : vector<1x96xf32> to vector<1x32xf32>
    %93 = arith.addf %91, %92 : vector<1x32xf32>
    %94 = arith.negf %93 : vector<1x32xf32>
    %95 = math.exp %94 : vector<1x32xf32>
    %cst_30 = arith.constant 1.000000e+00 : f32
    %96 = vector.broadcast %cst_30 : f32 to vector<1x32xf32>
    %97 = arith.addf %96, %95 : vector<1x32xf32>
    %98 = arith.divf %96, %97 : vector<1x32xf32>
    %99 = vector.extract_strided_slice %78 {offsets = [0, 64], sizes = [1, 32], strides = [1, 1]} : vector<1x96xf32> to vector<1x32xf32>
    %100 = vector.extract_strided_slice %82 {offsets = [0, 64], sizes = [1, 32], strides = [1, 1]} : vector<1x96xf32> to vector<1x32xf32>
    %101 = arith.mulf %90, %100 : vector<1x32xf32>
    %102 = arith.addf %99, %101 : vector<1x32xf32>
    %103 = math.tanh %102 : vector<1x32xf32>
    %cst_31 = arith.constant 1.000000e+00 : f32
    %104 = vector.broadcast %cst_31 : f32 to vector<1x32xf32>
    %105 = arith.subf %104, %98 : vector<1x32xf32>
    %106 = arith.mulf %105, %103 : vector<1x32xf32>
    %107 = arith.mulf %98, %72 : vector<1x32xf32>
    %108 = arith.addf %106, %107 : vector<1x32xf32>
    %109 = arith.index_cast %c2_i32 : i32 to index
    %c0_32 = arith.constant 0 : index
    %110 = vector.load %arg9[%109, %c0_32] : memref<8x32xf32, #tpu.memory_space<vmem>>, vector<1x32xf32>
    tpu.vector_store %arg9[%109, %c0_32], %108 {strides = array<i32>} : memref<8x32xf32, #tpu.memory_space<vmem>>, vector<1x32xf32>,
    %c3_i32 = arith.constant 3 : i32
    %111 = arith.index_cast %c3_i32 : i32 to index
    %112 = memref.load %arg0[%111] : memref<8xi32, #tpu.memory_space<smem>>
    %113 = arith.index_cast %112 : i32 to index
    %c0_33 = arith.constant 0 : index
    %114 = vector.load %arg1[%113, %c0_33] : memref<64x96xf32, #tpu.memory_space<vmem>>, vector<1x96xf32>
    %c0_34 = arith.constant 0 : index
    %c0_35 = arith.constant 0 : index
    %115 = vector.load %arg2[%c0_34, %c0_35] : memref<32x96xf32, #tpu.memory_space<vmem>>, vector<32x96xf32>
    %cst_36 = arith.constant dense<0.000000e+00> : vector<1x96xf32>
    %116 = tpu.matmul %108, %115, %cst_36 {dimension_numbers = #tpu.dot_dimension_numbers<[1], [0], [0], [1], [0, 0, 1, 1], [], []>} : vector<1x32xf32>, vector<32x96xf32>, vector<1x96xf32> -> vector<1x96xf32>
    %c0_37 = arith.constant 0 : index
    %c0_38 = arith.constant 0 : index
    %117 = vector.load %arg3[%c0_37, %c0_38] : memref<1x96xf32, #tpu.memory_space<vmem>>, vector<1x96xf32>
    %118 = arith.addf %116, %117 : vector<1x96xf32>
    %119 = vector.extract_strided_slice %114 {offsets = [0, 0], sizes = [1, 32], strides = [1, 1]} : vector<1x96xf32> to vector<1x32xf32>
    %120 = vector.extract_strided_slice %118 {offsets = [0, 0], sizes = [1, 32], strides = [1, 1]} : vector<1x96xf32> to vector<1x32xf32>
    %121 = arith.addf %119, %120 : vector<1x32xf32>
    %122 = arith.negf %121 : vector<1x32xf32>
    %123 = math.exp %122 : vector<1x32xf32>
    %cst_39 = arith.constant 1.000000e+00 : f32
    %124 = vector.broadcast %cst_39 : f32 to vector<1x32xf32>
    %125 = arith.addf %124, %123 : vector<1x32xf32>
    %126 = arith.divf %124, %125 : vector<1x32xf32>
    %127 = vector.extract_strided_slice %114 {offsets = [0, 32], sizes = [1, 32], strides = [1, 1]} : vector<1x96xf32> to vector<1x32xf32>
    %128 = vector.extract_strided_slice %118 {offsets = [0, 32], sizes = [1, 32], strides = [1, 1]} : vector<1x96xf32> to vector<1x32xf32>
    %129 = arith.addf %127, %128 : vector<1x32xf32>
    %130 = arith.negf %129 : vector<1x32xf32>
    %131 = math.exp %130 : vector<1x32xf32>
    %cst_40 = arith.constant 1.000000e+00 : f32
    %132 = vector.broadcast %cst_40 : f32 to vector<1x32xf32>
    %133 = arith.addf %132, %131 : vector<1x32xf32>
    %134 = arith.divf %132, %133 : vector<1x32xf32>
    %135 = vector.extract_strided_slice %114 {offsets = [0, 64], sizes = [1, 32], strides = [1, 1]} : vector<1x96xf32> to vector<1x32xf32>
    %136 = vector.extract_strided_slice %118 {offsets = [0, 64], sizes = [1, 32], strides = [1, 1]} : vector<1x96xf32> to vector<1x32xf32>
    %137 = arith.mulf %126, %136 : vector<1x32xf32>
    %138 = arith.addf %135, %137 : vector<1x32xf32>
    %139 = math.tanh %138 : vector<1x32xf32>
    %cst_41 = arith.constant 1.000000e+00 : f32
    %140 = vector.broadcast %cst_41 : f32 to vector<1x32xf32>
    %141 = arith.subf %140, %134 : vector<1x32xf32>
    %142 = arith.mulf %141, %139 : vector<1x32xf32>
    %143 = arith.mulf %134, %108 : vector<1x32xf32>
    %144 = arith.addf %142, %143 : vector<1x32xf32>
    %145 = arith.index_cast %c3_i32 : i32 to index
    %c0_42 = arith.constant 0 : index
    %146 = vector.load %arg9[%145, %c0_42] : memref<8x32xf32, #tpu.memory_space<vmem>>, vector<1x32xf32>
    tpu.vector_store %arg9[%145, %c0_42], %144 {strides = array<i32>} : memref<8x32xf32, #tpu.memory_space<vmem>>, vector<1x32xf32>,
    %c4_i32 = arith.constant 4 : i32
    %147 = arith.index_cast %c4_i32 : i32 to index
    %148 = memref.load %arg0[%147] : memref<8xi32, #tpu.memory_space<smem>>
    %149 = arith.index_cast %148 : i32 to index
    %c0_43 = arith.constant 0 : index
    %150 = vector.load %arg1[%149, %c0_43] : memref<64x96xf32, #tpu.memory_space<vmem>>, vector<1x96xf32>
    %c0_44 = arith.constant 0 : index
    %c0_45 = arith.constant 0 : index
    %151 = vector.load %arg2[%c0_44, %c0_45] : memref<32x96xf32, #tpu.memory_space<vmem>>, vector<32x96xf32>
    %cst_46 = arith.constant dense<0.000000e+00> : vector<1x96xf32>
    %152 = tpu.matmul %144, %151, %cst_46 {dimension_numbers = #tpu.dot_dimension_numbers<[1], [0], [0], [1], [0, 0, 1, 1], [], []>} : vector<1x32xf32>, vector<32x96xf32>, vector<1x96xf32> -> vector<1x96xf32>
    %c0_47 = arith.constant 0 : index
    %c0_48 = arith.constant 0 : index
    %153 = vector.load %arg3[%c0_47, %c0_48] : memref<1x96xf32, #tpu.memory_space<vmem>>, vector<1x96xf32>
    %154 = arith.addf %152, %153 : vector<1x96xf32>
    %155 = vector.extract_strided_slice %150 {offsets = [0, 0], sizes = [1, 32], strides = [1, 1]} : vector<1x96xf32> to vector<1x32xf32>
    %156 = vector.extract_strided_slice %154 {offsets = [0, 0], sizes = [1, 32], strides = [1, 1]} : vector<1x96xf32> to vector<1x32xf32>
    %157 = arith.addf %155, %156 : vector<1x32xf32>
    %158 = arith.negf %157 : vector<1x32xf32>
    %159 = math.exp %158 : vector<1x32xf32>
    %cst_49 = arith.constant 1.000000e+00 : f32
    %160 = vector.broadcast %cst_49 : f32 to vector<1x32xf32>
    %161 = arith.addf %160, %159 : vector<1x32xf32>
    %162 = arith.divf %160, %161 : vector<1x32xf32>
    %163 = vector.extract_strided_slice %150 {offsets = [0, 32], sizes = [1, 32], strides = [1, 1]} : vector<1x96xf32> to vector<1x32xf32>
    %164 = vector.extract_strided_slice %154 {offsets = [0, 32], sizes = [1, 32], strides = [1, 1]} : vector<1x96xf32> to vector<1x32xf32>
    %165 = arith.addf %163, %164 : vector<1x32xf32>
    %166 = arith.negf %165 : vector<1x32xf32>
    %167 = math.exp %166 : vector<1x32xf32>
    %cst_50 = arith.constant 1.000000e+00 : f32
    %168 = vector.broadcast %cst_50 : f32 to vector<1x32xf32>
    %169 = arith.addf %168, %167 : vector<1x32xf32>
    %170 = arith.divf %168, %169 : vector<1x32xf32>
    %171 = vector.extract_strided_slice %150 {offsets = [0, 64], sizes = [1, 32], strides = [1, 1]} : vector<1x96xf32> to vector<1x32xf32>
    %172 = vector.extract_strided_slice %154 {offsets = [0, 64], sizes = [1, 32], strides = [1, 1]} : vector<1x96xf32> to vector<1x32xf32>
    %173 = arith.mulf %162, %172 : vector<1x32xf32>
    %174 = arith.addf %171, %173 : vector<1x32xf32>
    %175 = math.tanh %174 : vector<1x32xf32>
    %cst_51 = arith.constant 1.000000e+00 : f32
    %176 = vector.broadcast %cst_51 : f32 to vector<1x32xf32>
    %177 = arith.subf %176, %170 : vector<1x32xf32>
    %178 = arith.mulf %177, %175 : vector<1x32xf32>
    %179 = arith.mulf %170, %144 : vector<1x32xf32>
    %180 = arith.addf %178, %179 : vector<1x32xf32>
    %181 = arith.index_cast %c4_i32 : i32 to index
    %c0_52 = arith.constant 0 : index
    %182 = vector.load %arg9[%181, %c0_52] : memref<8x32xf32, #tpu.memory_space<vmem>>, vector<1x32xf32>
    tpu.vector_store %arg9[%181, %c0_52], %180 {strides = array<i32>} : memref<8x32xf32, #tpu.memory_space<vmem>>, vector<1x32xf32>,
    %c5_i32 = arith.constant 5 : i32
    %183 = arith.index_cast %c5_i32 : i32 to index
    %184 = memref.load %arg0[%183] : memref<8xi32, #tpu.memory_space<smem>>
    %185 = arith.index_cast %184 : i32 to index
    %c0_53 = arith.constant 0 : index
    %186 = vector.load %arg1[%185, %c0_53] : memref<64x96xf32, #tpu.memory_space<vmem>>, vector<1x96xf32>
    %c0_54 = arith.constant 0 : index
    %c0_55 = arith.constant 0 : index
    %187 = vector.load %arg2[%c0_54, %c0_55] : memref<32x96xf32, #tpu.memory_space<vmem>>, vector<32x96xf32>
    %cst_56 = arith.constant dense<0.000000e+00> : vector<1x96xf32>
    %188 = tpu.matmul %180, %187, %cst_56 {dimension_numbers = #tpu.dot_dimension_numbers<[1], [0], [0], [1], [0, 0, 1, 1], [], []>} : vector<1x32xf32>, vector<32x96xf32>, vector<1x96xf32> -> vector<1x96xf32>
    %c0_57 = arith.constant 0 : index
    %c0_58 = arith.constant 0 : index
    %189 = vector.load %arg3[%c0_57, %c0_58] : memref<1x96xf32, #tpu.memory_space<vmem>>, vector<1x96xf32>
    %190 = arith.addf %188, %189 : vector<1x96xf32>
    %191 = vector.extract_strided_slice %186 {offsets = [0, 0], sizes = [1, 32], strides = [1, 1]} : vector<1x96xf32> to vector<1x32xf32>
    %192 = vector.extract_strided_slice %190 {offsets = [0, 0], sizes = [1, 32], strides = [1, 1]} : vector<1x96xf32> to vector<1x32xf32>
    %193 = arith.addf %191, %192 : vector<1x32xf32>
    %194 = arith.negf %193 : vector<1x32xf32>
    %195 = math.exp %194 : vector<1x32xf32>
    %cst_59 = arith.constant 1.000000e+00 : f32
    %196 = vector.broadcast %cst_59 : f32 to vector<1x32xf32>
    %197 = arith.addf %196, %195 : vector<1x32xf32>
    %198 = arith.divf %196, %197 : vector<1x32xf32>
    %199 = vector.extract_strided_slice %186 {offsets = [0, 32], sizes = [1, 32], strides = [1, 1]} : vector<1x96xf32> to vector<1x32xf32>
    %200 = vector.extract_strided_slice %190 {offsets = [0, 32], sizes = [1, 32], strides = [1, 1]} : vector<1x96xf32> to vector<1x32xf32>
    %201 = arith.addf %199, %200 : vector<1x32xf32>
    %202 = arith.negf %201 : vector<1x32xf32>
    %203 = math.exp %202 : vector<1x32xf32>
    %cst_60 = arith.constant 1.000000e+00 : f32
    %204 = vector.broadcast %cst_60 : f32 to vector<1x32xf32>
    %205 = arith.addf %204, %203 : vector<1x32xf32>
    %206 = arith.divf %204, %205 : vector<1x32xf32>
    %207 = vector.extract_strided_slice %186 {offsets = [0, 64], sizes = [1, 32], strides = [1, 1]} : vector<1x96xf32> to vector<1x32xf32>
    %208 = vector.extract_strided_slice %190 {offsets = [0, 64], sizes = [1, 32], strides = [1, 1]} : vector<1x96xf32> to vector<1x32xf32>
    %209 = arith.mulf %198, %208 : vector<1x32xf32>
    %210 = arith.addf %207, %209 : vector<1x32xf32>
    %211 = math.tanh %210 : vector<1x32xf32>
    %cst_61 = arith.constant 1.000000e+00 : f32
    %212 = vector.broadcast %cst_61 : f32 to vector<1x32xf32>
    %213 = arith.subf %212, %206 : vector<1x32xf32>
    %214 = arith.mulf %213, %211 : vector<1x32xf32>
    %215 = arith.mulf %206, %180 : vector<1x32xf32>
    %216 = arith.addf %214, %215 : vector<1x32xf32>
    %217 = arith.index_cast %c5_i32 : i32 to index
    %c0_62 = arith.constant 0 : index
    %218 = vector.load %arg9[%217, %c0_62] : memref<8x32xf32, #tpu.memory_space<vmem>>, vector<1x32xf32>
    tpu.vector_store %arg9[%217, %c0_62], %216 {strides = array<i32>} : memref<8x32xf32, #tpu.memory_space<vmem>>, vector<1x32xf32>,
    %c6_i32 = arith.constant 6 : i32
    %219 = arith.index_cast %c6_i32 : i32 to index
    %220 = memref.load %arg0[%219] : memref<8xi32, #tpu.memory_space<smem>>
    %221 = arith.index_cast %220 : i32 to index
    %c0_63 = arith.constant 0 : index
    %222 = vector.load %arg1[%221, %c0_63] : memref<64x96xf32, #tpu.memory_space<vmem>>, vector<1x96xf32>
    %c0_64 = arith.constant 0 : index
    %c0_65 = arith.constant 0 : index
    %223 = vector.load %arg2[%c0_64, %c0_65] : memref<32x96xf32, #tpu.memory_space<vmem>>, vector<32x96xf32>
    %cst_66 = arith.constant dense<0.000000e+00> : vector<1x96xf32>
    %224 = tpu.matmul %216, %223, %cst_66 {dimension_numbers = #tpu.dot_dimension_numbers<[1], [0], [0], [1], [0, 0, 1, 1], [], []>} : vector<1x32xf32>, vector<32x96xf32>, vector<1x96xf32> -> vector<1x96xf32>
    %c0_67 = arith.constant 0 : index
    %c0_68 = arith.constant 0 : index
    %225 = vector.load %arg3[%c0_67, %c0_68] : memref<1x96xf32, #tpu.memory_space<vmem>>, vector<1x96xf32>
    %226 = arith.addf %224, %225 : vector<1x96xf32>
    %227 = vector.extract_strided_slice %222 {offsets = [0, 0], sizes = [1, 32], strides = [1, 1]} : vector<1x96xf32> to vector<1x32xf32>
    %228 = vector.extract_strided_slice %226 {offsets = [0, 0], sizes = [1, 32], strides = [1, 1]} : vector<1x96xf32> to vector<1x32xf32>
    %229 = arith.addf %227, %228 : vector<1x32xf32>
    %230 = arith.negf %229 : vector<1x32xf32>
    %231 = math.exp %230 : vector<1x32xf32>
    %cst_69 = arith.constant 1.000000e+00 : f32
    %232 = vector.broadcast %cst_69 : f32 to vector<1x32xf32>
    %233 = arith.addf %232, %231 : vector<1x32xf32>
    %234 = arith.divf %232, %233 : vector<1x32xf32>
    %235 = vector.extract_strided_slice %222 {offsets = [0, 32], sizes = [1, 32], strides = [1, 1]} : vector<1x96xf32> to vector<1x32xf32>
    %236 = vector.extract_strided_slice %226 {offsets = [0, 32], sizes = [1, 32], strides = [1, 1]} : vector<1x96xf32> to vector<1x32xf32>
    %237 = arith.addf %235, %236 : vector<1x32xf32>
    %238 = arith.negf %237 : vector<1x32xf32>
    %239 = math.exp %238 : vector<1x32xf32>
    %cst_70 = arith.constant 1.000000e+00 : f32
    %240 = vector.broadcast %cst_70 : f32 to vector<1x32xf32>
    %241 = arith.addf %240, %239 : vector<1x32xf32>
    %242 = arith.divf %240, %241 : vector<1x32xf32>
    %243 = vector.extract_strided_slice %222 {offsets = [0, 64], sizes = [1, 32], strides = [1, 1]} : vector<1x96xf32> to vector<1x32xf32>
    %244 = vector.extract_strided_slice %226 {offsets = [0, 64], sizes = [1, 32], strides = [1, 1]} : vector<1x96xf32> to vector<1x32xf32>
    %245 = arith.mulf %234, %244 : vector<1x32xf32>
    %246 = arith.addf %243, %245 : vector<1x32xf32>
    %247 = math.tanh %246 : vector<1x32xf32>
    %cst_71 = arith.constant 1.000000e+00 : f32
    %248 = vector.broadcast %cst_71 : f32 to vector<1x32xf32>
    %249 = arith.subf %248, %242 : vector<1x32xf32>
    %250 = arith.mulf %249, %247 : vector<1x32xf32>
    %251 = arith.mulf %242, %216 : vector<1x32xf32>
    %252 = arith.addf %250, %251 : vector<1x32xf32>
    %253 = arith.index_cast %c6_i32 : i32 to index
    %c0_72 = arith.constant 0 : index
    %254 = vector.load %arg9[%253, %c0_72] : memref<8x32xf32, #tpu.memory_space<vmem>>, vector<1x32xf32>
    tpu.vector_store %arg9[%253, %c0_72], %252 {strides = array<i32>} : memref<8x32xf32, #tpu.memory_space<vmem>>, vector<1x32xf32>,
    %c7_i32 = arith.constant 7 : i32
    %255 = arith.index_cast %c7_i32 : i32 to index
    %256 = memref.load %arg0[%255] : memref<8xi32, #tpu.memory_space<smem>>
    %257 = arith.index_cast %256 : i32 to index
    %c0_73 = arith.constant 0 : index
    %258 = vector.load %arg1[%257, %c0_73] : memref<64x96xf32, #tpu.memory_space<vmem>>, vector<1x96xf32>
    %c0_74 = arith.constant 0 : index
    %c0_75 = arith.constant 0 : index
    %259 = vector.load %arg2[%c0_74, %c0_75] : memref<32x96xf32, #tpu.memory_space<vmem>>, vector<32x96xf32>
    %cst_76 = arith.constant dense<0.000000e+00> : vector<1x96xf32>
    %260 = tpu.matmul %252, %259, %cst_76 {dimension_numbers = #tpu.dot_dimension_numbers<[1], [0], [0], [1], [0, 0, 1, 1], [], []>} : vector<1x32xf32>, vector<32x96xf32>, vector<1x96xf32> -> vector<1x96xf32>
    %c0_77 = arith.constant 0 : index
    %c0_78 = arith.constant 0 : index
    %261 = vector.load %arg3[%c0_77, %c0_78] : memref<1x96xf32, #tpu.memory_space<vmem>>, vector<1x96xf32>
    %262 = arith.addf %260, %261 : vector<1x96xf32>
    %263 = vector.extract_strided_slice %258 {offsets = [0, 0], sizes = [1, 32], strides = [1, 1]} : vector<1x96xf32> to vector<1x32xf32>
    %264 = vector.extract_strided_slice %262 {offsets = [0, 0], sizes = [1, 32], strides = [1, 1]} : vector<1x96xf32> to vector<1x32xf32>
    %265 = arith.addf %263, %264 : vector<1x32xf32>
    %266 = arith.negf %265 : vector<1x32xf32>
    %267 = math.exp %266 : vector<1x32xf32>
    %cst_79 = arith.constant 1.000000e+00 : f32
    %268 = vector.broadcast %cst_79 : f32 to vector<1x32xf32>
    %269 = arith.addf %268, %267 : vector<1x32xf32>
    %270 = arith.divf %268, %269 : vector<1x32xf32>
    %271 = vector.extract_strided_slice %258 {offsets = [0, 32], sizes = [1, 32], strides = [1, 1]} : vector<1x96xf32> to vector<1x32xf32>
    %272 = vector.extract_strided_slice %262 {offsets = [0, 32], sizes = [1, 32], strides = [1, 1]} : vector<1x96xf32> to vector<1x32xf32>
    %273 = arith.addf %271, %272 : vector<1x32xf32>
    %274 = arith.negf %273 : vector<1x32xf32>
    %275 = math.exp %274 : vector<1x32xf32>
    %cst_80 = arith.constant 1.000000e+00 : f32
    %276 = vector.broadcast %cst_80 : f32 to vector<1x32xf32>
    %277 = arith.addf %276, %275 : vector<1x32xf32>
    %278 = arith.divf %276, %277 : vector<1x32xf32>
    %279 = vector.extract_strided_slice %258 {offsets = [0, 64], sizes = [1, 32], strides = [1, 1]} : vector<1x96xf32> to vector<1x32xf32>
    %280 = vector.extract_strided_slice %262 {offsets = [0, 64], sizes = [1, 32], strides = [1, 1]} : vector<1x96xf32> to vector<1x32xf32>
    %281 = arith.mulf %270, %280 : vector<1x32xf32>
    %282 = arith.addf %279, %281 : vector<1x32xf32>
    %283 = math.tanh %282 : vector<1x32xf32>
    %cst_81 = arith.constant 1.000000e+00 : f32
    %284 = vector.broadcast %cst_81 : f32 to vector<1x32xf32>
    %285 = arith.subf %284, %278 : vector<1x32xf32>
    %286 = arith.mulf %285, %283 : vector<1x32xf32>
    %287 = arith.mulf %278, %252 : vector<1x32xf32>
    %288 = arith.addf %286, %287 : vector<1x32xf32>
    %289 = arith.index_cast %c7_i32 : i32 to index
    %c0_82 = arith.constant 0 : index
    %290 = vector.load %arg9[%289, %c0_82] : memref<8x32xf32, #tpu.memory_space<vmem>>, vector<1x32xf32>
    tpu.vector_store %arg9[%289, %c0_82], %288 {strides = array<i32>} : memref<8x32xf32, #tpu.memory_space<vmem>>, vector<1x32xf32>,
    %c8_i32 = arith.constant 8 : i32
    %c0_83 = arith.constant 0 : index
    %c0_84 = arith.constant 0 : index
    %291 = vector.load %arg8[%c0_83, %c0_84] : memref<1x32xf32, #tpu.memory_space<vmem>>, vector<1x32xf32>
    tpu.vector_store %arg8[%c0_83, %c0_84], %288 {strides = array<i32>} : memref<1x32xf32, #tpu.memory_space<vmem>>, vector<1x32xf32>,
    %c0_85 = arith.constant 0 : index
    %c0_86 = arith.constant 0 : index
    %292 = vector.load %arg9[%c0_85, %c0_86] : memref<8x32xf32, #tpu.memory_space<vmem>>, vector<8x32xf32>
    %c0_87 = arith.constant 0 : index
    %c0_88 = arith.constant 0 : index
    %293 = vector.load %arg5[%c0_87, %c0_88] : memref<32x128xf32, #tpu.memory_space<vmem>>, vector<32x128xf32>
    %cst_89 = arith.constant dense<0.000000e+00> : vector<8x128xf32>
    %294 = tpu.matmul %292, %293, %cst_89 {dimension_numbers = #tpu.dot_dimension_numbers<[1], [0], [0], [1], [0, 0, 1, 1], [], []>} : vector<8x32xf32>, vector<32x128xf32>, vector<8x128xf32> -> vector<8x128xf32>
    %c0_90 = arith.constant 0 : index
    %c0_91 = arith.constant 0 : index
    %295 = vector.load %arg6[%c0_90, %c0_91] : memref<1x128xf32, #tpu.memory_space<vmem>>, vector<1x128xf32>
    %296 = vector.broadcast %295 : vector<1x128xf32> to vector<8x128xf32>
    %297 = arith.addf %294, %296 : vector<8x128xf32>
    %c0_92 = arith.constant 0 : index
    %c0_93 = arith.constant 0 : index
    %298 = vector.load %arg7[%c0_92, %c0_93] : memref<8x128xf32, #tpu.memory_space<vmem>>, vector<8x128xf32>
    tpu.vector_store %arg7[%c0_92, %c0_93], %297 {strides = array<i32>} : memref<8x128xf32, #tpu.memory_space<vmem>>, vector<8x128xf32>,
    return
  }
}

</mosaic_0001>

<bundles_post_ra>
// kernel: tpu_custom_call.1
= control target key start
LH: loop header
LB: loop body
LE: loop exit
PB: predicated region body
PF: predicated region fallthrough
CT: control target
= control target key end

     0   :  { %14 = vsyncpa [#allocation6], 0  ;;  %s1708_s0 = inlined_call_operand.hbm [shape: s32[8], index: 0, kind: input, shape index: {}]   ;;  %s1709_s1 = inlined_call_operand.hbm [shape: f32[64,96], index: 1, kind: input, shape index: {}]   ;;  %s1710_s2 = inlined_call_operand.hbm [shape: f32[32,96], index: 2, kind: input, shape index: {}]   ;;  %s1711_s3 = inlined_call_operand.vmem [shape: f32[1,96], index: 3, kind: input, shape index: {}]   ;;  %s1712_s4 = inlined_call_operand.vmem [shape: f32[1,32], index: 4, kind: input, shape index: {}]   ;;  %s1713_s5 = inlined_call_operand.hbm [shape: f32[32,128], index: 5, kind: input, shape index: {}]   ;;  %s1714_s6 = inlined_call_operand.vmem [shape: f32[1,128], index: 6, kind: input, shape index: {}]   ;;  %s1715_s7 = inlined_call_operand.hbm [shape: f32[8,128], index: 7, kind: output, shape index: {0}]   ;;  %s1716_s8 = inlined_call_operand.hbm [shape: f32[1,32], index: 8, kind: output, shape index: {1}]  }
   0x1   :  { %15 = vsyncpa [#allocation4], 0 }
   0x2   :  { %16 = vsyncpa [#allocation9], 0 }
   0x3   :  { %17 = vsyncpa [#allocation5], 0 }
   0x4   :  { %18 = vsyncpa [#allocation13], 0  ;;  %s1456_s27 = smov [#allocation8]   ;;  %s1457_s29 = smov [#allocation7]  }
   0x5   :  { %s44_s28 = sshll.u32 %s1456_s27, 4  ;;  %s32_s30 = sshll.u32 %s1457_s29, 4  ;;  %s45_s28 = int_to_ptr.vmem [resolvable:$true] %s44_s28  ;;  %s33_s30 = int_to_ptr.vmem [resolvable:$true] %s32_s30 }
   0x6   :  { %s1346_s9 = scalar_lea.vmem %s45_s28, 512  ;;  %p1351_p1 = scmp.lt.s32.totalorder %s45_s28, %s45_s28 }
   0x7   :  { %p1347_p0 = scmp.ne.s32.totalorder %s45_s28, %s1346_s9  ;;  %p1352_p2 = scmp.lt.s32.totalorder %s1346_s9, %s1346_s9 }
   0x9   :  { %p1353_p3 = por %p1352_p2, %p1351_p1 }
   0xb   :  { %p1354_p4 = pnand %p1353_p3, %p1347_p0 }
   0xd   :  { %1357 = shalt.err (!%p1354_p4)
}
   0xe   :  { %s1458_s10 = smov 128   ;;  %s1459_s11 = smov 8  }
   0xf   :  { %50 = dma.hbm_to_vmem [thread:$0]  %s1710_s2, 512, %s45_s28, [#allocation9], %s1458_s10, %s1458_s10, %s1459_s11  }
  0x10   :  { %s1460_s14 = smov [#allocation3]   ;;  %s1374_s17 = scalar_lea.vmem %s33_s30, 1024 }
  0x11   :  { %26 = dma.hbm_to_smem %s1708_s0, 16, %s1460_s14, [#allocation6]  }
  0x12   :  { %p1375_p5 = scmp.ne.s32.totalorder %s33_s30, %s1374_s17  ;;  %p1379_p6 = scmp.lt.s32.totalorder %s33_s30, %s33_s30 }
  0x13   :  { %p1380_p7 = scmp.lt.s32.totalorder %s1374_s17, %s1374_s17 }
  0x15   :  { %p1381_p8 = por %p1380_p7, %p1379_p6 }
  0x17   :  { %p1382_p9 = pnand %p1381_p8, %p1375_p5 }
  0x19   :  { %1385 = shalt.err (!%p1382_p9)
}
  0x1a   :  { %38 = dma.hbm_to_vmem [thread:$0]  %s1709_s1, 1024, %s33_s30, [#allocation4], %s1458_s10, %s1458_s10, %s1459_s11  }
  0x1b   :  { %s1461_s20 = smov [#allocation10]  }
  0x1c   :  { %s60_s21 = sshll.u32 %s1461_s20, 4  ;;  %s61_s21 = int_to_ptr.vmem [resolvable:$true] %s60_s21 }
  0x1d   :  { %s1394_s2 = scalar_lea.vmem %s61_s21, 512  ;;  %p1399_p11 = scmp.lt.s32.totalorder %s61_s21, %s61_s21 }
  0x1e   :  { %p1395_p10 = scmp.ne.s32.totalorder %s61_s21, %s1394_s2  ;;  %p1400_p12 = scmp.lt.s32.totalorder %s1394_s2, %s1394_s2 }
  0x20   :  { %p1401_p13 = por %p1400_p12, %p1399_p11 }
  0x22   :  { %p1402_p0 = pnand %p1401_p13, %p1395_p10 }
  0x24   :  { %1405 = shalt.err (!%p1402_p0)
}
  0x25   :  { %66 = dma.hbm_to_vmem [thread:$0]  %s1713_s5, 512, %s61_s21, [#allocation9], %s1458_s10, %s1458_s10, %s1459_s11  }
  0x26   :  { %1446 = dma.done.wait [#allocation6], 16  }
  0x27   :  { %1447 = vsyncadd [#allocation6], 4294967280 }
  0x28   :  { %1448 = dma.done.wait [#allocation4], 1024  }
  0x29   :  { %1449 = vsyncadd [#allocation4], 4294966272 }
  0x2a   :  { %1450 = dma.done.wait [#allocation9], 1024  }
  0x2b   :  { %1451 = vsyncadd [#allocation9], 4294966272 }
  0x2c   :  { %81 = sfence }
  0x2d   :  { %v1526_v0 = vld [vmem:[#allocation8 + $0x18] sm:$0xff]  ;;  %vm82_vm0 = vcmask 261120   ;;  %v1462_v1 = vmov 0.0   ;;  %v1529_v2 = vld [vmem:[#allocation8 + $0x10] sm:$0xff]  ;;  %vm1463_vm1 = vmmov 0   ;;  %v1538_v3 = vld [vmem:[#allocation8 + $0x8] sm:$0xff]  ;;  %v190_v20 = vlaneseq }
  0x2e   :  { %1178 = vmatprep.subr.mxu0 %v1462_v1  ;;  %1186 = vmatprep.mubr.msk.f32.mxu0 %vm1463_vm1, %v1462_v1  ;;  %83 = vst.msk [vmem:[#allocation2] sm:$0xff] %vm82_vm0, %v1462_v1  ;;  %v1544_v4 = vld [vmem:[#allocation8] sm:$0xff]  ;;  %v84_v5 = vld [vmem:[%s1712_s4] sm:$0x1]  ;;  %s1464_s24 = smov 64   ;;  %s85_s25 = sld [smem:[#allocation3]] }
  0x2f   :  { %1179 = vmatpush3.msra.mxu0 %v1526_v0  ;;  %1189 = vmatprep.subr.mxu1 %v1462_v1  ;;  %v92_v6 = vld [vmem:[%s1711_s3] sm:$0x1]  ;;  %v191_v21 = vshrl.u32 %v190_v20, 7  ;;  %s1465_s27 = smov 96   ;;  %s1466_s28 = smov 32   ;;  %vm203_vm2 = vcmask 253952  }
  0x30   :  { %1180 = vmatprep.subr.mxu0 %v1462_v1  ;;  %1190 = vmatpush3.msra.mxu1 %v1526_v0  ;;  %v212_v32 = vld [vmem:[%s1711_s3] sm:$0x1]  ;;  %s1110_s9 = sld [smem:[#allocation3 + $0x1]] }
  0x31   :  { %1181 = vmatpush3.msra.mxu0 %v1529_v2  ;;  %1191 = vmatprep.subr.mxu1 %v1462_v1  ;;  %v192_v22 = vsub.s32 0, %v191_v21  ;;  %v323_v53 = vld [vmem:[%s1711_s3] sm:$0x1]  ;;  %s1113_s13 = sld [smem:[#allocation3 + $0x2]] }
  0x32   :  { %1182 = vmatprep.subr.mxu0 %v1462_v1  ;;  %1192 = vmatpush3.msra.mxu1 %v1529_v2  ;;  %s1116_s17 = sld [smem:[#allocation3 + $0x3]] }
  0x33   :  { %1183 = vmatpush3.msra.mxu0 %v1538_v3  ;;  %1193 = vmatprep.subr.mxu1 %v1462_v1  ;;  %v193_v24 = vrot.slane %v84_v5, %v192_v22  ;;  %s1119_s21 = sld [smem:[#allocation3 + $0x4]] }
  0x34   :  { %1184 = vmatprep.subr.mxu0 %v1462_v1  ;;  %1194 = vmatpush3.msra.mxu1 %v1538_v3  ;;  %s86_s26 = scalar_lea.vmem [#allocation7], %s85_s25  ;;  %s1122_s1 = sld [smem:[#allocation3 + $0x5]] }
  0x35   :  { %1185 = vmatpush3.msra.mxu0 %v1544_v4  ;;  %1195 = vmatprep.subr.mxu1 %v1462_v1  ;;  %v87_v10 = vld [vmem:[%s86_s26] sm:$0x1]  ;;  %s1125_s25 = sld [smem:[#allocation3 + $0x6]] }
  0x36   :  { %1187 = vmatmul.mubr.msk.f32.vlgmr.msra.gmra.mxu0 %vm82_vm0, %v84_v5  ;;  %1196 = vmatpush3.msra.mxu1 %v1544_v4  ;;  %s206_s10 = scalar_lea.vmem [#allocation7], %s1110_s9  ;;  %s1128_s30 = sld [smem:[#allocation3 + $0x7]] }
  0x37   :  { %1197 = vmatprep.mubr.msk.f32.mxu1 %vm1463_vm1, %v1462_v1  ;;  %1200 = vmatprep.subr.mxu0 %v1462_v1  ;;  %v207_v36 = vld [vmem:[%s206_s10] sm:$0x1]  ;;  %s317_s14 = scalar_lea.vmem [#allocation7], %s1113_s13 }
  0x38   :  { %1201 = vmatpush3.msra.mxu0 %v1526_v0  ;;  %1208 = vmatprep.mubr.msk.f32.mxu0 %vm1463_vm1, %v1462_v1  ;;  %v318_v57 = vld [vmem:[%s317_s14] sm:$0x1]  ;;  %s428_s18 = scalar_lea.vmem [#allocation7], %s1116_s17 }
  0x39   :  { %1202 = vmatprep.subr.mxu0 %v1462_v1  ;;  %1211 = vmatprep.subr.mxu1 %v1462_v1  ;;  %s539_s2 = scalar_lea.vmem [#allocation7], %s1119_s21 }
  0x3a   :  { %1203 = vmatpush3.msra.mxu0 %v1529_v2  ;;  %s650_s5 = scalar_lea.vmem [#allocation7], %s1122_s1 }
  0x3b   :  { %1204 = vmatprep.subr.mxu0 %v1462_v1  ;;  %s761_s26 = scalar_lea.vmem [#allocation7], %s1125_s25 }
  0x3c   :  { %1205 = vmatpush3.msra.mxu0 %v1538_v3  ;;  %s872_s9 = scalar_lea.vmem [#allocation7], %s1128_s30 }
  0x3d   :  { %1206 = vmatprep.subr.mxu0 %v1462_v1 }
  0x3e   :  { %1207 = vmatpush3.msra.mxu0 %v1544_v4 }
  0x3f   :  { %1222 = vmatprep.subr.mxu0 %v1462_v1 }
  0xf6   :  { %v162_v7 = vpop.f32.mrf.mxu0 }
  0xf7   :  { %v163_v8 = vadd.f32 %v162_v7, %v92_v6 }
  0xf8   :  { %v1188_v9 = vpop.f32.mrf.mxu0 }
  0xf9   :  { %174 = vrot.lane.b32.xlu0 %v163_v8, %s1464_s24  ;;  %v166_v11 = vadd.f32 %v163_v8, %v87_v10 }
  0xfb   :  { %v1109_v12 = vmul.f32 -1.442695, %v166_v11 }
  0xfd   :  { %1290 = vpow2.f32 %v1109_v12 }
 0x10a   :  { %v1291_v13 = vpop.eup %1290 }
 0x10b   :  { %v170_v14 = vadd.f32 1.0, %v1291_v13 }
 0x10d   :  { %1292 = vrcp.f32 %v170_v14 }
 0x11a   :  { %v1293_v15 = vpop.eup %1292 }
 0x11b   :  { %v184_v26 = vsub.f32 1.0, %v1293_v15 }
 0x16b   :  { %v175_v16 = vpop.permute.xlu0 %174 }
 0x16c   :  { %v177_v17 = vmul.f32 %v1293_v15, %v175_v16 }
 0x16e   :  { %179 = vrot.lane.b32.xlu0 %v177_v17, %s1464_s24 }
 0x1e0   :  { %v180_v18 = vpop.permute.xlu0 %179 }
 0x1e1   :  { %v182_v19 = vadd.f32 %v180_v18, %v87_v10 }
 0x1e3   :  { %1294 = vtanh.f32 %v182_v19  ;;  %v429_v19 = vld [vmem:[%s428_s18] sm:$0x1] }
 0x1f0   :  { %v1295_v23 = vpop.eup %1294 }
 0x1f1   :  { %186 = vrot.lane.b32.xlu1 %v1295_v23, %s1465_s27 }
 0x1f5   :  { %194 = vrot.lane.b32.xlu1 %v193_v24, %s1466_s28 }
 0x263   :  { %v187_v25 = vpop.permute.xlu1 %186 }
 0x264   :  { %v189_v28 = vmul.f32 %v187_v25, %v184_v26 }
 0x267   :  { %v195_v27 = vpop.permute.xlu1 %194 }
 0x268   :  { %v197_v29 = vmul.f32 %v1293_v15, %v195_v27  ;;  %v434_v15 = vld [vmem:[%s1711_s3] sm:$0x1] }
 0x26a   :  { %v198_v30 = vadd.f32 %v197_v29, %v189_v28 }
 0x26c   :  { %200 = vrot.lane.b32.xlu0 %v198_v30, %s1465_s27 }
 0x2de   :  { %v201_v31 = vpop.permute.xlu0 %200 }
 0x2df   :  { %204 = vst.msk [vmem:[#allocation2] sm:$0x1] %vm203_vm2, %v201_v31  ;;  %1198 = vmatmul.mubr.msk.f32.vlgmr.msra.gmra.mxu1 %vm82_vm0, %v201_v31 }
 0x2e0   :  { %1212 = vmatpush3.msra.mxu1 %v1526_v0  ;;  %1219 = vmatprep.mubr.msk.f32.mxu1 %vm1463_vm1, %v1462_v1 }
 0x2e1   :  { %1213 = vmatprep.subr.mxu1 %v1462_v1 }
 0x2e2   :  { %1214 = vmatpush3.msra.mxu1 %v1529_v2 }
 0x2e3   :  { %1215 = vmatprep.subr.mxu1 %v1462_v1 }
 0x2e4   :  { %1216 = vmatpush3.msra.mxu1 %v1538_v3 }
 0x2e5   :  { %1217 = vmatprep.subr.mxu1 %v1462_v1 }
 0x2e6   :  { %1218 = vmatpush3.msra.mxu1 %v1544_v4 }
 0x2e7   :  { %1233 = vmatprep.subr.mxu1 %v1462_v1 }
 0x39f   :  { %v281_v33 = vpop.f32.mrf.mxu1 }
 0x3a0   :  { %v282_v34 = vadd.f32 %v281_v33, %v212_v32 }
 0x3a1   :  { %v1199_v35 = vpop.f32.mrf.mxu1 }
 0x3a2   :  { %293 = vrot.lane.b32.xlu1 %v282_v34, %s1464_s24  ;;  %v285_v37 = vadd.f32 %v282_v34, %v207_v36 }
 0x3a4   :  { %v1112_v38 = vmul.f32 -1.442695, %v285_v37 }
 0x3a6   :  { %1296 = vpow2.f32 %v1112_v38 }
 0x3b3   :  { %v1297_v39 = vpop.eup %1296 }
 0x3b4   :  { %v289_v40 = vadd.f32 1.0, %v1297_v39 }
 0x3b6   :  { %1298 = vrcp.f32 %v289_v40  ;;  %v540_v40 = vld [vmem:[%s539_s2] sm:$0x1] }
 0x3c3   :  { %v1299_v41 = vpop.eup %1298 }
 0x3c4   :  { %v303_v47 = vsub.f32 1.0, %v1299_v41  ;;  %v309_v49 = vmul.f32 %v1299_v41, %v198_v30 }
 0x414   :  { %v294_v42 = vpop.permute.xlu1 %293 }
 0x415   :  { %v296_v43 = vmul.f32 %v1299_v41, %v294_v42 }
 0x417   :  { %298 = vrot.lane.b32.xlu0 %v296_v43, %s1464_s24 }
 0x489   :  { %v299_v44 = vpop.permute.xlu0 %298 }
 0x48a   :  { %v301_v45 = vadd.f32 %v299_v44, %v207_v36  ;;  %v545_v36 = vld [vmem:[%s1711_s3] sm:$0x1] }
 0x48c   :  { %1300 = vtanh.f32 %v301_v45 }
 0x499   :  { %v1301_v46 = vpop.eup %1300 }
 0x49a   :  { %305 = vrot.lane.b32.xlu1 %v1301_v46, %s1465_s27 }
 0x50c   :  { %v306_v48 = vpop.permute.xlu1 %305 }
 0x50d   :  { %v308_v50 = vmul.f32 %v306_v48, %v303_v47 }
 0x50f   :  { %v310_v51 = vadd.f32 %v309_v49, %v308_v50 }
 0x511   :  { %312 = vrot.lane.b32.xlu0 %v310_v51, %s1465_s27 }
 0x583   :  { %v313_v52 = vpop.permute.xlu0 %312 }
 0x584   :  { %315 = vst.msk [vmem:[#allocation2 + $0x1] sm:$0x1] %vm203_vm2, %v313_v52  ;;  %1209 = vmatmul.mubr.msk.f32.vlgmr.msra.gmra.mxu0 %vm82_vm0, %v313_v52 }
 0x585   :  { %1223 = vmatpush3.msra.mxu0 %v1526_v0  ;;  %1230 = vmatprep.mubr.msk.f32.mxu0 %vm1463_vm1, %v1462_v1 }
 0x586   :  { %1224 = vmatprep.subr.mxu0 %v1462_v1 }
 0x587   :  { %1225 = vmatpush3.msra.mxu0 %v1529_v2 }
 0x588   :  { %1226 = vmatprep.subr.mxu0 %v1462_v1 }
 0x589   :  { %1227 = vmatpush3.msra.mxu0 %v1538_v3 }
 0x58a   :  { %1228 = vmatprep.subr.mxu0 %v1462_v1 }
 0x58b   :  { %1229 = vmatpush3.msra.mxu0 %v1544_v4 }
 0x58c   :  { %1244 = vmatprep.subr.mxu0 %v1462_v1 }
 0x644   :  { %v392_v54 = vpop.f32.mrf.mxu0 }
 0x645   :  { %v393_v55 = vadd.f32 %v392_v54, %v323_v53 }
 0x646   :  { %v1210_v56 = vpop.f32.mrf.mxu0 }
 0x647   :  { %404 = vrot.lane.b32.xlu1 %v393_v55, %s1464_s24  ;;  %v396_v58 = vadd.f32 %v393_v55, %v318_v57 }
 0x649   :  { %v1115_v59 = vmul.f32 -1.442695, %v396_v58 }
 0x64b   :  { %1302 = vpow2.f32 %v1115_v59 }
 0x658   :  { %v1303_v60 = vpop.eup %1302 }
 0x659   :  { %v400_v61 = vadd.f32 1.0, %v1303_v60 }
 0x65b   :  { %1304 = vrcp.f32 %v400_v61 }
 0x668   :  { %v1305_v62 = vpop.eup %1304 }
 0x669   :  { %v414_v9 = vsub.f32 1.0, %v1305_v62  ;;  %v420_v11 = vmul.f32 %v1305_v62, %v310_v51 }
 0x6b9   :  { %v405_v63 = vpop.permute.xlu1 %404 }
 0x6ba   :  { %v407_v5 = vmul.f32 %v1305_v62, %v405_v63 }
 0x6bc   :  { %409 = vrot.lane.b32.xlu0 %v407_v5, %s1464_s24 }
 0x72e   :  { %v410_v6 = vpop.permute.xlu0 %409 }
 0x72f   :  { %v412_v7 = vadd.f32 %v410_v6, %v318_v57  ;;  %v656_v57 = vld [vmem:[%s1711_s3] sm:$0x1] }
 0x731   :  { %1306 = vtanh.f32 %v412_v7 }
 0x73e   :  { %v1307_v8 = vpop.eup %1306 }
 0x73f   :  { %416 = vrot.lane.b32.xlu1 %v1307_v8, %s1465_s27 }
 0x7b1   :  { %v417_v10 = vpop.permute.xlu1 %416 }
 0x7b2   :  { %v419_v12 = vmul.f32 %v417_v10, %v414_v9 }
 0x7b4   :  { %v421_v13 = vadd.f32 %v420_v11, %v419_v12 }
 0x7b6   :  { %423 = vrot.lane.b32.xlu0 %v421_v13, %s1465_s27 }
 0x828   :  { %v424_v14 = vpop.permute.xlu0 %423 }
 0x829   :  { %426 = vst.msk [vmem:[#allocation2 + $0x2] sm:$0x1] %vm203_vm2, %v424_v14  ;;  %1220 = vmatmul.mubr.msk.f32.vlgmr.msra.gmra.mxu1 %vm82_vm0, %v424_v14 }
 0x82a   :  { %1234 = vmatpush3.msra.mxu1 %v1526_v0  ;;  %1241 = vmatprep.mubr.msk.f32.mxu1 %vm1463_vm1, %v1462_v1 }
 0x82b   :  { %1235 = vmatprep.subr.mxu1 %v1462_v1 }
 0x82c   :  { %1236 = vmatpush3.msra.mxu1 %v1529_v2 }
 0x82d   :  { %1237 = vmatprep.subr.mxu1 %v1462_v1 }
 0x82e   :  { %1238 = vmatpush3.msra.mxu1 %v1538_v3 }
 0x82f   :  { %1239 = vmatprep.subr.mxu1 %v1462_v1 }
 0x830   :  { %1240 = vmatpush3.msra.mxu1 %v1544_v4 }
 0x831   :  { %1255 = vmatprep.subr.mxu1 %v1462_v1 }
 0x8e9   :  { %v503_v16 = vpop.f32.mrf.mxu1 }
 0x8ea   :  { %v504_v17 = vadd.f32 %v503_v16, %v434_v15  ;;  %v767_v15 = vld [vmem:[%s1711_s3] sm:$0x1] }
 0x8eb   :  { %v1221_v18 = vpop.f32.mrf.mxu1 }
 0x8ec   :  { %515 = vrot.lane.b32.xlu1 %v504_v17, %s1464_s24  ;;  %v507_v20 = vadd.f32 %v504_v17, %v429_v19 }
 0x8ee   :  { %v1118_v21 = vmul.f32 -1.442695, %v507_v20 }
 0x8f0   :  { %1308 = vpow2.f32 %v1118_v21 }
 0x8fd   :  { %v1309_v22 = vpop.eup %1308 }
 0x8fe   :  { %v511_v23 = vadd.f32 1.0, %v1309_v22 }
 0x900   :  { %1310 = vrcp.f32 %v511_v23 }
 0x90d   :  { %v1311_v24 = vpop.eup %1310 }
 0x90e   :  { %v525_v30 = vsub.f32 1.0, %v1311_v24  ;;  %v531_v32 = vmul.f32 %v1311_v24, %v421_v13 }
 0x95e   :  { %v516_v25 = vpop.permute.xlu1 %515 }
 0x95f   :  { %v518_v26 = vmul.f32 %v1311_v24, %v516_v25 }
 0x961   :  { %520 = vrot.lane.b32.xlu0 %v518_v26, %s1464_s24 }
 0x9d3   :  { %v521_v27 = vpop.permute.xlu0 %520 }
 0x9d4   :  { %v523_v28 = vadd.f32 %v521_v27, %v429_v19  ;;  %v762_v19 = vld [vmem:[%s761_s26] sm:$0x1] }
 0x9d6   :  { %1312 = vtanh.f32 %v523_v28 }
 0x9e3   :  { %v1313_v29 = vpop.eup %1312 }
 0x9e4   :  { %527 = vrot.lane.b32.xlu1 %v1313_v29, %s1465_s27 }
 0xa56   :  { %v528_v31 = vpop.permute.xlu1 %527 }
 0xa57   :  { %v530_v33 = vmul.f32 %v528_v31, %v525_v30 }
 0xa59   :  { %v532_v34 = vadd.f32 %v531_v32, %v530_v33 }
 0xa5b   :  { %534 = vrot.lane.b32.xlu0 %v532_v34, %s1465_s27 }
 0xacd   :  { %v535_v35 = vpop.permute.xlu0 %534 }
 0xace   :  { %537 = vst.msk [vmem:[#allocation2 + $0x3] sm:$0x1] %vm203_vm2, %v535_v35  ;;  %1231 = vmatmul.mubr.msk.f32.vlgmr.msra.gmra.mxu0 %vm82_vm0, %v535_v35 }
 0xacf   :  { %1245 = vmatpush3.msra.mxu0 %v1526_v0  ;;  %1252 = vmatprep.mubr.msk.f32.mxu0 %vm1463_vm1, %v1462_v1 }
 0xad0   :  { %1246 = vmatprep.subr.mxu0 %v1462_v1 }
 0xad1   :  { %1247 = vmatpush3.msra.mxu0 %v1529_v2 }
 0xad2   :  { %1248 = vmatprep.subr.mxu0 %v1462_v1 }
 0xad3   :  { %1249 = vmatpush3.msra.mxu0 %v1538_v3 }
 0xad4   :  { %1250 = vmatprep.subr.mxu0 %v1462_v1 }
 0xad5   :  { %1251 = vmatpush3.msra.mxu0 %v1544_v4 }
 0xad6   :  { %1266 = vmatprep.subr.mxu0 %v1462_v1 }
 0xb8e   :  { %v614_v37 = vpop.f32.mrf.mxu0 }
 0xb8f   :  { %v615_v38 = vadd.f32 %v614_v37, %v545_v36  ;;  %v878_v36 = vld [vmem:[%s1711_s3] sm:$0x1]  ;;  %s1467_s3 = smov [#allocation12]  }
 0xb90   :  { %v1232_v39 = vpop.f32.mrf.mxu0 }
 0xb91   :  { %626 = vrot.lane.b32.xlu1 %v615_v38, %s1464_s24  ;;  %v618_v41 = vadd.f32 %v615_v38, %v540_v40 }
 0xb93   :  { %v1121_v42 = vmul.f32 -1.442695, %v618_v41 }
 0xb95   :  { %1314 = vpow2.f32 %v1121_v42 }
 0xba2   :  { %v1315_v43 = vpop.eup %1314 }
 0xba3   :  { %v622_v44 = vadd.f32 1.0, %v1315_v43 }
 0xba5   :  { %1316 = vrcp.f32 %v622_v44 }
 0xbb2   :  { %v1317_v45 = vpop.eup %1316 }
 0xbb3   :  { %v636_v51 = vsub.f32 1.0, %v1317_v45  ;;  %v642_v53 = vmul.f32 %v1317_v45, %v532_v34 }
 0xc03   :  { %v627_v46 = vpop.permute.xlu1 %626 }
 0xc04   :  { %v629_v47 = vmul.f32 %v1317_v45, %v627_v46 }
 0xc06   :  { %631 = vrot.lane.b32.xlu0 %v629_v47, %s1464_s24 }
 0xc78   :  { %v632_v48 = vpop.permute.xlu0 %631 }
 0xc79   :  { %v634_v49 = vadd.f32 %v632_v48, %v540_v40  ;;  %v873_v40 = vld [vmem:[%s872_s9] sm:$0x1] }
 0xc7b   :  { %1318 = vtanh.f32 %v634_v49 }
 0xc88   :  { %v1319_v50 = vpop.eup %1318 }
 0xc89   :  { %638 = vrot.lane.b32.xlu1 %v1319_v50, %s1465_s27 }
 0xcfb   :  { %v639_v52 = vpop.permute.xlu1 %638 }
 0xcfc   :  { %v641_v54 = vmul.f32 %v639_v52, %v636_v51  ;;  %v987_v51 = vld [vmem:[#allocation10 + $0x18] sm:$0xff]  ;;  %v986_v52 = vld [vmem:[#allocation10 + $0x10] sm:$0xff] }
 0xcfe   :  { %v643_v55 = vadd.f32 %v642_v53, %v641_v54  ;;  %v985_v53 = vld [vmem:[#allocation10 + $0x8] sm:$0xff]  ;;  %v984_v54 = vld [vmem:[#allocation10] sm:$0xff] }
 0xd00   :  { %645 = vrot.lane.b32.xlu0 %v643_v55, %s1465_s27 }
 0xd72   :  { %v646_v56 = vpop.permute.xlu0 %645 }
 0xd73   :  { %648 = vst.msk [vmem:[#allocation2 + $0x4] sm:$0x1] %vm203_vm2, %v646_v56  ;;  %1242 = vmatmul.mubr.msk.f32.vlgmr.msra.gmra.mxu1 %vm82_vm0, %v646_v56 }
 0xd74   :  { %1256 = vmatpush3.msra.mxu1 %v1526_v0  ;;  %1263 = vmatprep.mubr.msk.f32.mxu1 %vm1463_vm1, %v1462_v1 }
 0xd75   :  { %1257 = vmatprep.subr.mxu1 %v1462_v1 }
 0xd76   :  { %1258 = vmatpush3.msra.mxu1 %v1529_v2  ;;  %v651_v2 = vld [vmem:[%s650_s5] sm:$0x1] }
 0xd77   :  { %1259 = vmatprep.subr.mxu1 %v1462_v1 }
 0xd78   :  { %1260 = vmatpush3.msra.mxu1 %v1538_v3 }
 0xd79   :  { %1261 = vmatprep.subr.mxu1 %v1462_v1 }
 0xd7a   :  { %1262 = vmatpush3.msra.mxu1 %v1544_v4 }
 0xe33   :  { %v725_v0 = vpop.f32.mrf.mxu1 }
 0xe34   :  { %v726_v58 = vadd.f32 %v725_v0, %v656_v57 }
 0xe35   :  { %v1243_v59 = vpop.f32.mrf.mxu1 }
 0xe36   :  { %737 = vrot.lane.b32.xlu1 %v726_v58, %s1464_s24  ;;  %v729_v60 = vadd.f32 %v726_v58, %v651_v2 }
 0xe38   :  { %v1124_v61 = vmul.f32 -1.442695, %v729_v60 }
 0xe3a   :  { %1320 = vpow2.f32 %v1124_v61 }
 0xe47   :  { %v1321_v3 = vpop.eup %1320 }
 0xe48   :  { %v733_v62 = vadd.f32 1.0, %v1321_v3 }
 0xe4a   :  { %1322 = vrcp.f32 %v733_v62 }
 0xe57   :  { %v1323_v63 = vpop.eup %1322 }
 0xe58   :  { %v747_v9 = vsub.f32 1.0, %v1323_v63  ;;  %v753_v11 = vmul.f32 %v1323_v63, %v643_v55 }
 0xea8   :  { %v738_v4 = vpop.permute.xlu1 %737 }
 0xea9   :  { %v740_v5 = vmul.f32 %v1323_v63, %v738_v4 }
 0xeab   :  { %742 = vrot.lane.b32.xlu0 %v740_v5, %s1464_s24 }
 0xf1d   :  { %v743_v6 = vpop.permute.xlu0 %742 }
 0xf1e   :  { %v745_v7 = vadd.f32 %v743_v6, %v651_v2 }
 0xf20   :  { %1324 = vtanh.f32 %v745_v7 }
 0xf2d   :  { %v1325_v8 = vpop.eup %1324 }
 0xf2e   :  { %749 = vrot.lane.b32.xlu1 %v1325_v8, %s1465_s27 }
 0xfa0   :  { %v750_v10 = vpop.permute.xlu1 %749 }
 0xfa1   :  { %v752_v12 = vmul.f32 %v750_v10, %v747_v9 }
 0xfa3   :  { %v754_v13 = vadd.f32 %v753_v11, %v752_v12 }
 0xfa5   :  { %756 = vrot.lane.b32.xlu0 %v754_v13, %s1465_s27 }
0x1017   :  { %v757_v14 = vpop.permute.xlu0 %756 }
0x1018   :  { %759 = vst.msk [vmem:[#allocation2 + $0x5] sm:$0x1] %vm203_vm2, %v757_v14  ;;  %1253 = vmatmul.mubr.msk.f32.vlgmr.msra.gmra.mxu0 %vm82_vm0, %v757_v14 }
0x1019   :  { %1274 = vmatprep.mubr.msk.f32.mxu0 %vm1463_vm1, %v1462_v1  ;;  %1267 = vmatpush3.msra.mxu0 %v987_v51 }
0x101a   :  { %1268 = vmatprep.subr.mxu0 %v1462_v1 }
0x101b   :  { %1269 = vmatpush3.msra.mxu0 %v986_v52 }
0x101c   :  { %1270 = vmatprep.subr.mxu0 %v1462_v1 }
0x101d   :  { %1271 = vmatpush3.msra.mxu0 %v985_v53 }
0x101e   :  { %1272 = vmatprep.subr.mxu0 %v1462_v1 }
0x101f   :  { %1273 = vmatpush3.msra.mxu0 %v984_v54 }
0x10d8   :  { %v836_v16 = vpop.f32.mrf.mxu0 }
0x10d9   :  { %v837_v17 = vadd.f32 %v836_v16, %v767_v15 }
0x10da   :  { %v1254_v18 = vpop.f32.mrf.mxu0 }
0x10db   :  { %848 = vrot.lane.b32.xlu1 %v837_v17, %s1464_s24  ;;  %v840_v20 = vadd.f32 %v837_v17, %v762_v19 }
0x10dd   :  { %v1127_v21 = vmul.f32 -1.442695, %v840_v20 }
0x10df   :  { %1326 = vpow2.f32 %v1127_v21 }
0x10ec   :  { %v1327_v22 = vpop.eup %1326 }
0x10ed   :  { %v844_v23 = vadd.f32 1.0, %v1327_v22 }
0x10ef   :  { %1328 = vrcp.f32 %v844_v23 }
0x10fc   :  { %v1329_v24 = vpop.eup %1328 }
0x10fd   :  { %v858_v30 = vsub.f32 1.0, %v1329_v24  ;;  %v864_v32 = vmul.f32 %v1329_v24, %v754_v13 }
0x114d   :  { %v849_v25 = vpop.permute.xlu1 %848 }
0x114e   :  { %v851_v26 = vmul.f32 %v1329_v24, %v849_v25 }
0x1150   :  { %853 = vrot.lane.b32.xlu0 %v851_v26, %s1464_s24 }
0x11c2   :  { %v854_v27 = vpop.permute.xlu0 %853 }
0x11c3   :  { %v856_v28 = vadd.f32 %v854_v27, %v762_v19 }
0x11c5   :  { %1330 = vtanh.f32 %v856_v28 }
0x11d2   :  { %v1331_v29 = vpop.eup %1330 }
0x11d3   :  { %860 = vrot.lane.b32.xlu1 %v1331_v29, %s1465_s27 }
0x1245   :  { %v861_v31 = vpop.permute.xlu1 %860 }
0x1246   :  { %v863_v33 = vmul.f32 %v861_v31, %v858_v30 }
0x1248   :  { %v865_v34 = vadd.f32 %v864_v32, %v863_v33 }
0x124a   :  { %867 = vrot.lane.b32.xlu0 %v865_v34, %s1465_s27 }
0x12bc   :  { %v868_v35 = vpop.permute.xlu0 %867 }
0x12bd   :  { %870 = vst.msk [vmem:[#allocation2 + $0x6] sm:$0x1] %vm203_vm2, %v868_v35  ;;  %1264 = vmatmul.mubr.msk.f32.vlgmr.msra.gmra.mxu1 %vm82_vm0, %v868_v35 }
0x137d   :  { %v947_v37 = vpop.f32.mrf.mxu1 }
0x137e   :  { %v948_v38 = vadd.f32 %v947_v37, %v878_v36 }
0x137f   :  { %v1265_v39 = vpop.f32.mrf.mxu1 }
0x1380   :  { %959 = vrot.lane.b32.xlu1 %v948_v38, %s1464_s24  ;;  %v951_v41 = vadd.f32 %v948_v38, %v873_v40 }
0x1382   :  { %v1130_v42 = vmul.f32 -1.442695, %v951_v41 }
0x1384   :  { %1332 = vpow2.f32 %v1130_v42 }
0x1391   :  { %v1333_v43 = vpop.eup %1332 }
0x1392   :  { %v955_v44 = vadd.f32 1.0, %v1333_v43 }
0x1394   :  { %1334 = vrcp.f32 %v955_v44 }
0x13a1   :  { %v1335_v45 = vpop.eup %1334 }
0x13a2   :  { %v969_v55 = vsub.f32 1.0, %v1335_v45  ;;  %v975_v57 = vmul.f32 %v1335_v45, %v865_v34 }
0x13f2   :  { %v960_v46 = vpop.permute.xlu1 %959 }
0x13f3   :  { %v962_v47 = vmul.f32 %v1335_v45, %v960_v46 }
0x13f5   :  { %964 = vrot.lane.b32.xlu0 %v962_v47, %s1464_s24  ;;  %s1085_s24 = sshll.u32 %s1467_s3, 4  ;;  %s1086_s24 = int_to_ptr.vmem [resolvable:$true] %s1085_s24 }
0x13f6   :  { %s1406_s10 = scalar_lea.vmem %s1086_s24, 16  ;;  %s1410_s11 = scalar_lea.vmem %s1086_s24, 32 }
0x13f7   :  { %p1407_p1 = scmp.ne.s32.totalorder %s1086_s24, %s1406_s10  ;;  %p1411_p2 = scmp.lt.s32.totalorder %s1086_s24, %s1086_s24 }
0x13f8   :  { %p1412_p3 = scmp.lt.s32.totalorder %s1410_s11, %s1406_s10 }
0x13fa   :  { %p1413_p4 = por %p1412_p3, %p1411_p2 }
0x13fc   :  { %p1414_p5 = pnand %p1413_p4, %p1407_p1 }
0x1467   :  { %v965_v48 = vpop.permute.xlu0 %964 }
0x1468   :  { %v967_v49 = vadd.f32 %v965_v48, %v873_v40 }
0x146a   :  { %1336 = vtanh.f32 %v967_v49 }
0x1477   :  { %v1337_v50 = vpop.eup %1336 }
0x1478   :  { %971 = vrot.lane.b32.xlu1 %v1337_v50, %s1465_s27 }
0x14ea   :  { %v972_v56 = vpop.permute.xlu1 %971 }
0x14eb   :  { %v974_v0 = vmul.f32 %v972_v56, %v969_v55 }
0x14ed   :  { %v976_v58 = vadd.f32 %v975_v57, %v974_v0 }
0x14ef   :  { %978 = vrot.lane.b32.xlu0 %v976_v58, %s1465_s27 }
0x1561   :  { %v979_v59 = vpop.permute.xlu0 %978 }
0x1562   :  { %981 = vst.msk [vmem:[#allocation2 + $0x7] sm:$0x1] %vm203_vm2, %v979_v59  ;;  %982 = vst.msk [vmem:[#allocation12] sm:$0x1] %vm203_vm2, %v979_v59 }
0x1569   :  { %v983_v2 = vld [vmem:[#allocation2] sm:$0xff] }
0x156a   :  { %1275 = vmatmul.mubr.msk.f32.vlgmr.msra.gmra.mxu0 %vm82_vm0, %v983_v2 }
0x156b   :  { %1417 = shalt.err (!%p1414_p5)
}
0x156c   :  { %1088 = dma.vmem_to_hbm [thread:$0]  %s1086_s24, 16, %s1716_s8, [#allocation13]   ;;  %v1131_v1 = vld [vmem:[%s1714_s6] ss:$0 sm:$0xff] }
0x156d   :  { %s1468_s15 = smov [#allocation11]  }
0x156e   :  { %s1075_s16 = sshll.u32 %s1468_s15, 4  ;;  %s1076_s16 = int_to_ptr.vmem [resolvable:$true] %s1075_s16 }
0x156f   :  { %s1426_s17 = scalar_lea.vmem %s1076_s16, 128  ;;  %p1431_p7 = scmp.lt.s32.totalorder %s1076_s16, %s1076_s16 }
0x1570   :  { %p1427_p6 = scmp.ne.s32.totalorder %s1076_s16, %s1426_s17  ;;  %p1432_p8 = scmp.lt.s32.totalorder %s1426_s17, %s1426_s17 }
0x1572   :  { %p1433_p9 = por %p1432_p8, %p1431_p7 }
0x1574   :  { %p1434_p10 = pnand %p1433_p9, %p1427_p6 }
0x162a   :  { %v1064_v60 = vpop.f32.mrf.mxu0 }
0x162b   :  { %v1065_v61 = vadd.f32 %v1131_v1, %v1064_v60 }
0x162c   :  { %v1276_v3 = vpop.f32.mrf.mxu0 }
0x162d   :  { %1068 = vst [vmem:[#allocation11] sm:$0xff] %v1065_v61 }
0x162e   :  { %1437 = shalt.err (!%p1434_p10)
}
0x162f   :  { %1078 = dma.vmem_to_hbm [thread:$0]  %s1076_s16, 128, %s1715_s7, [#allocation5]  }
0x1630   :  { %1452 = dma.done.wait [#allocation5], 128  }
0x1631   :  { %1453 = vsyncadd [#allocation5], 4294967168 }
0x1632   :  { %1454 = dma.done.wait [#allocation13], 16  }
0x1633   :  { %1455 = vsyncadd [#allocation13], 4294967280 }
0x1634   :  { %1095 = vsyncpa [#allocation4], 1 }
0x1635   :  { %1096 = vsyncpa [#allocation9], 1 }
0x1636   :  { %1097 = vsyncpa [#allocation5], 1 }
0x1637   :  { %1098 = vsyncpa [#allocation13], 1 }
0x1638   :  { %1099 = vsyncpa [#allocation6], 1 }

</bundles_post_ra>
